<compile_context>
chip_gen: v5e
topology: v5e:2x2
jax: 0.10.0
libtpu: 0.0.40
codegen_flags: <defaults>
</compile_context>

<pallas_src>
import functools

import jax
import jax.numpy as jnp
from jax.experimental import pallas as pl
from jax.experimental.pallas import tpu as pltpu

LEAKY_SLOPE = 0.01   # F.leaky_relu default negative_slope
LN_EPS = 1e-6        # nn.LayerNorm(d_in, eps=1e-06)

_HAS_BUFFERED = hasattr(pl, "Buffered")


def _round_up(x, m):
    return ((x + m - 1) // m) * m


def _resident_spec(block_shape, index_map):
    """BlockSpec for a block whose index never changes -> single-buffer it."""
    if _HAS_BUFFERED:
        try:
            return pl.BlockSpec(block_shape, index_map,
                                pipeline_mode=pl.Buffered(1))
        except TypeError:       # older BlockSpec without pipeline_mode
            pass
    return pl.BlockSpec(block_shape, index_map)


# --------------------------------------------------------------------------
# Kernel
# --------------------------------------------------------------------------
def _ffn_kernel(x_ref, w1_ref, b1_ref, w2_ref, b2_ref, g_ref, beta_ref,
                o_ref, acc_ref, *, d_in, compute_dtype):
    # grid = (row tiles [parallel], d_hid blocks [arbitrary, reduction-last])
    k = pl.program_id(1)
    x = x_ref[...]                               # (tm, d_in_p), padded lanes 0

    @pl.when(k == 0)
    def _():
        # Seed accumulator with residual + second-layer bias (f32).
        acc_ref[...] = x.astype(jnp.float32) + b2_ref[...]

    # ---- h = leaky_relu(x @ W1^T + b1) for this d_hid block (f32 math) -----
    h = jnp.dot(x.astype(compute_dtype), w1_ref[...],
                preferred_element_type=jnp.float32) + b1_ref[...]
    h = jnp.maximum(h, LEAKY_SLOPE * h)          # mul + max (2 VALU ops)

    # ---- accumulate this block's W2 contribution ----------------------------
    acc_ref[...] += jnp.dot(h.astype(compute_dtype), w2_ref[...],
                            preferred_element_type=jnp.float32)

    # ---- epilogue: LayerNorm over the *real* d_in lanes ----------------------
    @pl.when(k == pl.num_programs(1) - 1)
    def _():
        y = acc_ref[...]
        d_pad = y.shape[-1]
        inv_n = 1.0 / d_in
        if d_in == d_pad:
            mean = jnp.sum(y, axis=-1, keepdims=True) * inv_n
            cent = y - mean
        else:
            lane = jax.lax.broadcasted_iota(jnp.int32, (1, d_pad), 1)
            mask = lane < d_in
            y = jnp.where(mask, y, 0.0)
            mean = jnp.sum(y, axis=-1, keepdims=True) * inv_n
            cent = jnp.where(mask, y - mean, 0.0)
        var = jnp.sum(cent * cent, axis=-1, keepdims=True) * inv_n
        yn = cent * jax.lax.rsqrt(var + LN_EPS)
        o_ref[...] = (yn * g_ref[...] + beta_ref[...]).astype(o_ref.dtype)


# --------------------------------------------------------------------------
# One-time parameter preprocessing (hoisted out of the per-call path)
# --------------------------------------------------------------------------
def prepare_ffn_params(w1, b1, w2, b2, gamma, beta, *,
                       compute_dtype=jnp.bfloat16):
    """Transpose / lane-pad (multiples of 128) / cast the weights ONCE.

    w1: (d_hid, d_in), w2: (d_in, d_hid)  (PyTorch nn.Linear layout).
    Weights are stored pre-transposed in the MXU operand dtype; bias, gamma,
    beta stay f32 (bias add / residual / LN statistics are always f32).
    """
    d_hid, d_in = w1.shape
    d_in_p = _round_up(d_in, 128)
    d_hid_p = _round_up(d_hid, 128)
    return {
        "w1t": jnp.pad(w1.T, ((0, d_in_p - d_in), (0, d_hid_p - d_hid))
                       ).astype(compute_dtype),
        "w2t": jnp.pad(w2.T, ((0, d_hid_p - d_hid), (0, d_in_p - d_in))
                       ).astype(compute_dtype),
        "b1": jnp.pad(b1, (0, d_hid_p - d_hid)).reshape(1, d_hid_p
                                                        ).astype(jnp.float32),
        "b2": jnp.pad(b2, (0, d_in_p - d_in)).reshape(1, d_in_p
                                                      ).astype(jnp.float32),
        "gamma": jnp.pad(gamma, (0, d_in_p - d_in)).reshape(1, d_in_p
                                                            ).astype(jnp.float32),
        "beta": jnp.pad(beta, (0, d_in_p - d_in)).reshape(1, d_in_p
                                                          ).astype(jnp.float32),
        "d_in": d_in, "d_hid": d_hid, "d_in_p": d_in_p, "d_hid_p": d_hid_p,
        "compute_dtype": compute_dtype,
    }


# --------------------------------------------------------------------------
# Generation-aware VMEM budget & tiling
# --------------------------------------------------------------------------
def _vmem_budget_bytes():
    physical = 64 << 20                      # conservative default (v7x per-TC)
    try:
        info = pltpu.get_tpu_info()
        cap = getattr(info, "vmem_capacity_bytes", None)
        if cap:
            physical = int(cap)
    except Exception:
        pass
    # ~15% headroom for Mosaic internal scratch / semaphores:
    #   128 MiB (v5e/v6e) -> ~108 MiB, 64 MiB (v7x per-TC) -> ~54 MiB.
    return int(physical * 0.85)


def _choose_tiling(M, d_in_p, d_hid_p, x_sz, w_sz, budget):
    """Pick (tm, M_padded, t_hid) from the per-TC VMEM budget."""
    M8 = _round_up(M, 8)

    # ---- d_hid blocking: full resident weights (single-buffered) when they
    # fit in half the budget, otherwise stream 128-multiple blocks. ----------
    w_buf = 1 if _HAS_BUFFERED else 2
    if w_buf * 2 * d_in_p * d_hid_p * w_sz <= budget // 2:
        t_hid, n_w_buf = d_hid_p, w_buf
    else:
        n_w_buf = 2                          # blocks change per k -> dbl-buffer
        n128 = d_hid_p // 128
        t_hid = 128
        for m in range(n128, 0, -1):
            if n128 % m == 0 and \
               n_w_buf * 2 * d_in_p * (m * 128) * w_sz <= budget // 2:
                t_hid = m * 128
                break
    w_bytes = n_w_buf * 2 * d_in_p * t_hid * w_sz

    # ---- honest per-row VMEM bytes (includes bf16 copies of x and h) -------
    per_row = (d_in_p * (2 * x_sz            # x tile (double-buffered)
                         + 2 * x_sz          # out tile (double-buffered)
                         + 4                 # f32 accumulator scratch
                         + 4 + 2)            # f32 temporaries + bf16 copy of x
               + t_hid * (4 + 2))            # h (f32) + bf16 copy of h
    small = 4 * 4 * (t_hid + 3 * d_in_p)     # biases / gamma / beta (generous)
    avail = max(budget - w_bytes - small, 8 * per_row)

    tm_target = 512 if budget >= (96 << 20) else 256   # v5e/v6e vs v7x
    tm_max = max(8, (min(tm_target, int(avail // per_row)) // 8) * 8)

    # ---- row tiling: avoid padding M when a good divisor exists ------------
    if M8 <= tm_max:
        return M8, M8, t_hid
    best = max(t for t in range(8, tm_max + 1, 8) if M8 % t == 0)
    if best >= 128 or 4 * best >= tm_max:
        return best, M8, t_hid               # no row padding beyond 8-align
    tm = max(128, (tm_max // 128) * 128) if tm_max >= 128 else tm_max
    return tm, _round_up(M8, tm), t_hid


# --------------------------------------------------------------------------
# Forward pass
# --------------------------------------------------------------------------
def positionwise_ffn(x, params):
    """PositionwiseFeedForward forward (eval mode). x: [..., d_in]."""
    d_in = params["d_in"]
    d_in_p = params["d_in_p"]
    d_hid_p = params["d_hid_p"]
    compute_dtype = params["compute_dtype"]

    orig_shape = x.shape
    x2d = x.reshape(-1, d_in)
    M = x2d.shape[0]

    x_sz = jnp.dtype(x.dtype).itemsize
    w_sz = jnp.dtype(compute_dtype).itemsize
    budget = _vmem_budget_bytes()
    tm, M_p, t_hid = _choose_tiling(M, d_in_p, d_hid_p, x_sz, w_sz, budget)

    padded = (M_p != M) or (d_in_p != d_in)
    if padded:
        x2d = jnp.pad(x2d, ((0, M_p - M), (0, d_in_p - d_in)))

    n_kb = d_hid_p // t_hid
    grid = (M_p // tm, n_kb)

    # Weight blocks are constant across the grid only when d_hid isn't tiled.
    w_spec = _resident_spec if n_kb == 1 else pl.BlockSpec
    in_specs = [
        pl.BlockSpec((tm, d_in_p), lambda i, k: (i, 0)),      # x tile
        w_spec((d_in_p, t_hid), lambda i, k: (0, k)),         # W1^T block
        w_spec((1, t_hid), lambda i, k: (0, k)),               # b1 block
        w_spec((t_hid, d_in_p), lambda i, k: (k, 0)),          # W2^T block
        _resident_spec((1, d_in_p), lambda i, k: (0, 0)),      # b2
        _resident_spec((1, d_in_p), lambda i, k: (0, 0)),      # gamma
        _resident_spec((1, d_in_p), lambda i, k: (0, 0)),      # beta
    ]

    cost = pl.CostEstimate(
        flops=4 * M_p * d_in_p * d_hid_p,                      # 2 matmuls
        transcendentals=M_p,                                   # rsqrt per row
        bytes_accessed=(2 * M_p * d_in_p * x_sz
                        + 2 * d_in_p * d_hid_p * w_sz
                        + 4 * (d_hid_p + 3 * d_in_p)),
    )

    kernel = functools.partial(_ffn_kernel, d_in=d_in,
                               compute_dtype=compute_dtype)

    out = pl.pallas_call(
        kernel,
        out_shape=jax.ShapeDtypeStruct((M_p, d_in_p), x.dtype),
        grid_spec=pltpu.PrefetchScalarGridSpec(
            num_scalar_prefetch=0,
            grid=grid,
            in_specs=in_specs,
            out_specs=pl.BlockSpec((tm, d_in_p), lambda i, k: (i, 0)),
            scratch_shapes=[pltpu.VMEM((tm, d_in_p), jnp.float32)],
        ),
        compiler_params=pltpu.CompilerParams(
            dimension_semantics=("parallel", "arbitrary"),
            vmem_limit_bytes=int(budget),
        ),
        cost_estimate=cost,
    )(x2d, params["w1t"], params["b1"], params["w2t"], params["b2"],
      params["gamma"], params["beta"])

    if padded:
        out = out[:M, :d_in]
    return out.reshape(orig_shape)


def _reference(x, w1, b1, w2, b2, gamma, beta, compute_dtype=jnp.bfloat16):
    """Pure-JAX reference matching the PyTorch forward (eval mode), using the
    same MXU operand dtype / f32 accumulation as the kernel."""
    residual = x
    h = jnp.dot(x.astype(compute_dtype), w1.T.astype(compute_dtype),
                preferred_element_type=jnp.float32) + b1
    h = jnp.where(h >= 0, h, LEAKY_SLOPE * h)
    y = jnp.dot(h.astype(compute_dtype), w2.T.astype(compute_dtype),
                preferred_element_type=jnp.float32) + b2
    y = y + residual
    mean = jnp.mean(y, axis=-1, keepdims=True)
    var = jnp.mean((y - mean) ** 2, axis=-1, keepdims=True)
    return (y - mean) * jax.lax.rsqrt(var + LN_EPS) * gamma + beta


if __name__ == "__main__":
    def run_case(batch, seq, d_in, d_hid, key):
        kx, k1, kb1, k2, kb2, kg, kbt = jax.random.split(key, 7)
        x = jax.random.normal(kx, (batch, seq, d_in), dtype=jnp.float32)

        # nn.Linear-style uniform init bounds
        bound1 = 1.0 / (d_in ** 0.5)
        w1 = jax.random.uniform(k1, (d_hid, d_in), minval=-bound1,
                                maxval=bound1, dtype=jnp.float32)
        b1 = jax.random.uniform(kb1, (d_hid,), minval=-bound1,
                                maxval=bound1, dtype=jnp.float32)
        bound2 = 1.0 / (d_hid ** 0.5)
        w2 = jax.random.uniform(k2, (d_in, d_hid), minval=-bound2,
                                maxval=bound2, dtype=jnp.float32)
        b2 = jax.random.uniform(kb2, (d_in,), minval=-bound2,
                                maxval=bound2, dtype=jnp.float32)
        gamma = 1.0 + 0.1 * jax.random.normal(kg, (d_in,), dtype=jnp.float32)
        beta = 0.1 * jax.random.normal(kbt, (d_in,), dtype=jnp.float32)

        # One-time (hoisted) weight preprocessing, then the kernel call.
        params = prepare_ffn_params(w1, b1, w2, b2, gamma, beta)
        out = positionwise_ffn(x, params)
        out = jax.block_until_ready(out)

        ref = _reference(x, w1, b1, w2, b2, gamma, beta)
        assert out.shape == x.shape
        err = float(jnp.max(jnp.abs(out - ref)))
        assert jnp.allclose(out, ref, atol=2e-3, rtol=2e-3), \
            f"mismatch vs reference (max abs err {err})"

    key = jax.random.PRNGKey(0)
    k_a, k_b = jax.random.split(key)
    # tiny, unaligned shapes -> exercises lane padding + masked LayerNorm
    run_case(batch=2, seq=8, d_in=32, d_hid=64, key=k_a)
    # small, 128-aligned shapes -> exercises the padding-free fast path
    run_case(batch=2, seq=64, d_in=128, d_hid=256, key=k_b)

    # TODO(synk): training-mode dropout (RNG mask via pltpu.prng_*) is not
    # implemented; this kernel matches the module's eval-mode forward.
    print("KERNEL_OK")
</pallas_src>

<mosaic_0001>
module attributes {stable_mosaic.version = 11 : i64} {
  func.func @_ffn_kernel(%arg0: i32, %arg1: i32, %arg2: memref<16x128xf32, #tpu.memory_space<vmem>>, %arg3: memref<128x128xbf16, #tpu.memory_space<vmem>>, %arg4: memref<1x128xf32, #tpu.memory_space<vmem>>, %arg5: memref<128x128xbf16, #tpu.memory_space<vmem>>, %arg6: memref<1x128xf32, #tpu.memory_space<vmem>>, %arg7: memref<1x128xf32, #tpu.memory_space<vmem>>, %arg8: memref<1x128xf32, #tpu.memory_space<vmem>>, %arg9: memref<16x128xf32, #tpu.memory_space<vmem>>, %arg10: memref<16x128xf32, #tpu.memory_space<vmem>>) attributes {dimension_semantics = [#tpu.dimension_semantics<parallel>, #tpu.dimension_semantics<arbitrary>], iteration_bounds = array<i64: 1, 1>, scalar_prefetch = 0 : i64, scratch_operands = 1 : i64, tpu.core_type = #tpu.core_type<tc>, window_params = [{transform_indices = @transform_0, window_bounds = array<i64: 16, 128>}, {pipeline_mode = #tpu.pipeline_mode<synchronous>, transform_indices = @transform_1, window_bounds = array<i64: 128, 128>}, {pipeline_mode = #tpu.pipeline_mode<synchronous>, transform_indices = @transform_2, window_bounds = array<i64: 1, 128>}, {pipeline_mode = #tpu.pipeline_mode<synchronous>, transform_indices = @transform_3, window_bounds = array<i64: 128, 128>}, {pipeline_mode = #tpu.pipeline_mode<synchronous>, transform_indices = @transform_4, window_bounds = array<i64: 1, 128>}, {pipeline_mode = #tpu.pipeline_mode<synchronous>, transform_indices = @transform_5, window_bounds = array<i64: 1, 128>}, {pipeline_mode = #tpu.pipeline_mode<synchronous>, transform_indices = @transform_6, window_bounds = array<i64: 1, 128>}, {transform_indices = @transform_7, window_bounds = array<i64: 16, 128>}]} {
    %c0 = arith.constant 0 : index
    %c0_0 = arith.constant 0 : index
    %0 = vector.load %arg2[%c0, %c0_0] : memref<16x128xf32, #tpu.memory_space<vmem>>, vector<16x128xf32>
    %c0_i32 = arith.constant 0 : i32
    %1 = arith.cmpi eq, %arg1, %c0_i32 : i32
    %2 = arith.extui %1 : i1 to i32
    %c0_i32_1 = arith.constant 0 : i32
    %3 = arith.cmpi ne, %2, %c0_i32_1 : i32
    scf.if %3 {
      %c0_16 = arith.constant 0 : index
      %c0_17 = arith.constant 0 : index
      %22 = vector.load %arg6[%c0_16, %c0_17] : memref<1x128xf32, #tpu.memory_space<vmem>>, vector<1x128xf32>
      %23 = vector.broadcast %22 : vector<1x128xf32> to vector<16x128xf32>
      %24 = arith.addf %0, %23 : vector<16x128xf32>
      %c0_18 = arith.constant 0 : index
      %c0_19 = arith.constant 0 : index
      %25 = vector.load %arg10[%c0_18, %c0_19] : memref<16x128xf32, #tpu.memory_space<vmem>>, vector<16x128xf32>
      tpu.vector_store %arg10[%c0_18, %c0_19], %24 {strides = array<i32>} : memref<16x128xf32, #tpu.memory_space<vmem>>, vector<16x128xf32>,
    } else {
    }
    %4 = arith.truncf %0 : vector<16x128xf32> to vector<16x128xbf16>
    %c0_2 = arith.constant 0 : index
    %c0_3 = arith.constant 0 : index
    %5 = vector.load %arg3[%c0_2, %c0_3] : memref<128x128xbf16, #tpu.memory_space<vmem>>, vector<128x128xbf16>
    %cst = arith.constant dense<0.000000e+00> : vector<16x128xf32>
    %6 = tpu.matmul %4, %5, %cst {dimension_numbers = #tpu.dot_dimension_numbers<[1], [0], [0], [1], [0, 0, 1, 1], [], []>} : vector<16x128xbf16>, vector<128x128xbf16>, vector<16x128xf32> -> vector<16x128xf32>
    %c0_4 = arith.constant 0 : index
    %c0_5 = arith.constant 0 : index
    %7 = vector.load %arg4[%c0_4, %c0_5] : memref<1x128xf32, #tpu.memory_space<vmem>>, vector<1x128xf32>
    %8 = vector.broadcast %7 : vector<1x128xf32> to vector<16x128xf32>
    %9 = arith.addf %6, %8 : vector<16x128xf32>
    %cst_6 = arith.constant 0.00999999977 : f32
    %10 = vector.broadcast %cst_6 : f32 to vector<16x128xf32>
    %11 = arith.mulf %10, %9 : vector<16x128xf32>
    %12 = arith.maximumf %9, %11 : vector<16x128xf32>
    %c0_7 = arith.constant 0 : index
    %c0_8 = arith.constant 0 : index
    %13 = vector.load %arg10[%c0_7, %c0_8] : memref<16x128xf32, #tpu.memory_space<vmem>>, vector<16x128xf32>
    %14 = arith.truncf %12 : vector<16x128xf32> to vector<16x128xbf16>
    %c0_9 = arith.constant 0 : index
    %c0_10 = arith.constant 0 : index
    %15 = vector.load %arg5[%c0_9, %c0_10] : memref<128x128xbf16, #tpu.memory_space<vmem>>, vector<128x128xbf16>
    %cst_11 = arith.constant dense<0.000000e+00> : vector<16x128xf32>
    %16 = tpu.matmul %14, %15, %cst_11 {dimension_numbers = #tpu.dot_dimension_numbers<[1], [0], [0], [1], [0, 0, 1, 1], [], []>} : vector<16x128xbf16>, vector<128x128xbf16>, vector<16x128xf32> -> vector<16x128xf32>
    %17 = arith.addf %13, %16 : vector<16x128xf32>
    %c0_12 = arith.constant 0 : index
    %c0_13 = arith.constant 0 : index
    %18 = vector.load %arg10[%c0_12, %c0_13] : memref<16x128xf32, #tpu.memory_space<vmem>>, vector<16x128xf32>
    tpu.vector_store %arg10[%c0_12, %c0_13], %17 {strides = array<i32>} : memref<16x128xf32, #tpu.memory_space<vmem>>, vector<16x128xf32>,
    %c0_i32_14 = arith.constant 0 : i32
    %19 = arith.cmpi eq, %arg1, %c0_i32_14 : i32
    %20 = arith.extui %19 : i1 to i32
    %c0_i32_15 = arith.constant 0 : i32
    %21 = arith.cmpi ne, %20, %c0_i32_15 : i32
    scf.if %21 {
      %c0_16 = arith.constant 0 : index
      %c0_17 = arith.constant 0 : index
      %22 = vector.load %arg10[%c0_16, %c0_17] : memref<16x128xf32, #tpu.memory_space<vmem>>, vector<16x128xf32>
      %23 = tpu.iota {dimensions = array<i32: 1>} : vector<1x128xi32>
      %c32_i32 = arith.constant 32 : i32
      %24 = vector.broadcast %c32_i32 : i32 to vector<1x128xi32>
      %25 = arith.cmpi slt, %23, %24 : vector<1x128xi32>
      %cst_18 = arith.constant 0.000000e+00 : f32
      %26 = vector.shape_cast %25 : vector<1x128xi1> to vector<1x128xi1>
      %27 = vector.broadcast %26 : vector<1x128xi1> to vector<16x128xi1>
      %28 = vector.broadcast %cst_18 : f32 to vector<16x128xf32>
      %29 = arith.select %27, %22, %28 : vector<16x128xi1>, vector<16x128xf32>
      %cst_19 = arith.constant dense<0.000000e+00> : vector<16xf32>
      %30 = vector.multi_reduction <add>, %29, %cst_19 [1] : vector<16x128xf32> to vector<16xf32>
      %31 = vector.shape_cast %30 : vector<16xf32> to vector<16x1xf32>
      %cst_20 = arith.constant 3.125000e-02 : f32
      %32 = vector.broadcast %cst_20 : f32 to vector<16x1xf32>
      %33 = arith.mulf %31, %32 : vector<16x1xf32>
      %34 = vector.broadcast %33 : vector<16x1xf32> to vector<16x128xf32>
      %35 = arith.subf %29, %34 : vector<16x128xf32>
      %cst_21 = arith.constant 0.000000e+00 : f32
      %36 = vector.shape_cast %25 : vector<1x128xi1> to vector<1x128xi1>
      %37 = vector.broadcast %36 : vector<1x128xi1> to vector<16x128xi1>
      %38 = vector.broadcast %cst_21 : f32 to vector<16x128xf32>
      %39 = arith.select %37, %35, %38 : vector<16x128xi1>, vector<16x128xf32>
      %40 = arith.mulf %39, %39 : vector<16x128xf32>
      %cst_22 = arith.constant dense<0.000000e+00> : vector<16xf32>
      %41 = vector.multi_reduction <add>, %40, %cst_22 [1] : vector<16x128xf32> to vector<16xf32>
      %42 = vector.shape_cast %41 : vector<16xf32> to vector<16x1xf32>
      %cst_23 = arith.constant 3.125000e-02 : f32
      %43 = vector.broadcast %cst_23 : f32 to vector<16x1xf32>
      %44 = arith.mulf %42, %43 : vector<16x1xf32>
      %cst_24 = arith.constant 9.99999997E-7 : f32
      %45 = vector.broadcast %cst_24 : f32 to vector<16x1xf32>
      %46 = arith.addf %44, %45 : vector<16x1xf32>
      %47 = math.rsqrt %46 : vector<16x1xf32>
      %48 = vector.broadcast %47 : vector<16x1xf32> to vector<16x128xf32>
      %49 = arith.mulf %39, %48 : vector<16x128xf32>
      %c0_25 = arith.constant 0 : index
      %c0_26 = arith.constant 0 : index
      %50 = vector.load %arg7[%c0_25, %c0_26] : memref<1x128xf32, #tpu.memory_space<vmem>>, vector<1x128xf32>
      %51 = vector.broadcast %50 : vector<1x128xf32> to vector<16x128xf32>
      %52 = arith.mulf %49, %51 : vector<16x128xf32>
      %c0_27 = arith.constant 0 : index
      %c0_28 = arith.constant 0 : index
      %53 = vector.load %arg8[%c0_27, %c0_28] : memref<1x128xf32, #tpu.memory_space<vmem>>, vector<1x128xf32>
      %54 = vector.broadcast %53 : vector<1x128xf32> to vector<16x128xf32>
      %55 = arith.addf %52, %54 : vector<16x128xf32>
      %c0_29 = arith.constant 0 : index
      %c0_30 = arith.constant 0 : index
      %56 = vector.load %arg9[%c0_29, %c0_30] : memref<16x128xf32, #tpu.memory_space<vmem>>, vector<16x128xf32>
      tpu.vector_store %arg9[%c0_29, %c0_30], %55 {strides = array<i32>} : memref<16x128xf32, #tpu.memory_space<vmem>>, vector<16x128xf32>,
    } else {
    }
    return
  }
  func.func @transform_0(%arg0: i32, %arg1: i32) -> (i32, i32) {
    %c0_i32 = arith.constant 0 : i32
    %c0_i32_0 = arith.constant 0 : i32
    return %arg0, %c0_i32 : i32, i32
  }
  func.func @transform_1(%arg0: i32, %arg1: i32) -> (i32, i32) {
    %c0_i32 = arith.constant 0 : i32
    %c0_i32_0 = arith.constant 0 : i32
    return %c0_i32, %arg1 : i32, i32
  }
  func.func @transform_2(%arg0: i32, %arg1: i32) -> (i32, i32) {
    %c0_i32 = arith.constant 0 : i32
    %c0_i32_0 = arith.constant 0 : i32
    return %c0_i32, %arg1 : i32, i32
  }
  func.func @transform_3(%arg0: i32, %arg1: i32) -> (i32, i32) {
    %c0_i32 = arith.constant 0 : i32
    %c0_i32_0 = arith.constant 0 : i32
    return %arg1, %c0_i32 : i32, i32
  }
  func.func @transform_4(%arg0: i32, %arg1: i32) -> (i32, i32) {
    %c0_i32 = arith.constant 0 : i32
    %c0_i32_0 = arith.constant 0 : i32
    %c0_i32_1 = arith.constant 0 : i32
    return %c0_i32, %c0_i32_0 : i32, i32
  }
  func.func @transform_5(%arg0: i32, %arg1: i32) -> (i32, i32) {
    %c0_i32 = arith.constant 0 : i32
    %c0_i32_0 = arith.constant 0 : i32
    %c0_i32_1 = arith.constant 0 : i32
    return %c0_i32, %c0_i32_0 : i32, i32
  }
  func.func @transform_6(%arg0: i32, %arg1: i32) -> (i32, i32) {
    %c0_i32 = arith.constant 0 : i32
    %c0_i32_0 = arith.constant 0 : i32
    %c0_i32_1 = arith.constant 0 : i32
    return %c0_i32, %c0_i32_0 : i32, i32
  }
  func.func @transform_7(%arg0: i32, %arg1: i32) -> (i32, i32) {
    %c0_i32 = arith.constant 0 : i32
    %c0_i32_0 = arith.constant 0 : i32
    return %arg0, %c0_i32 : i32, i32
  }
}

</mosaic_0001>

<bundles_post_ra>
// kernel: tpu_custom_call.1
= control target key start
LH: loop header
LB: loop body
LE: loop exit
PB: predicated region body
PF: predicated region fallthrough
CT: control target
= control target key end

     0   :  { %12 = vsyncpa [#allocation4], 0  ;;  %s628_s0 = inlined_call_operand.hbm [shape: f32[16,128], index: 0, kind: input, shape index: {}]   ;;  %s629_s1 = inlined_call_operand.hbm [shape: bf16[128,128], index: 1, kind: input, shape index: {}]   ;;  %s630_s2 = inlined_call_operand.vmem [shape: f32[1,128], index: 2, kind: input, shape index: {}]   ;;  %s631_s3 = inlined_call_operand.hbm [shape: bf16[128,128], index: 3, kind: input, shape index: {}]   ;;  %s632_s4 = inlined_call_operand.vmem [shape: f32[1,128], index: 4, kind: input, shape index: {}]   ;;  %s633_s5 = inlined_call_operand.vmem [shape: f32[1,128], index: 5, kind: input, shape index: {}]   ;;  %s634_s6 = inlined_call_operand.vmem [shape: f32[1,128], index: 6, kind: input, shape index: {}]   ;;  %s635_s7 = inlined_call_operand.hbm [shape: f32[16,128], index: 7, kind: output, shape index: {}]  }
   0x1   :  { %13 = vsyncpa [#allocation7], 0  ;;  %s32_s26 = sshll.u32 %s629_s1, 4  ;;  %s33_s26 = int_to_ptr.hbm [resolvable:$true] %s32_s26 }
   0x2   :  { %14 = vsyncpa [#allocation5], 0  ;;  %s546_s27 = smov [#allocation6]   ;;  %s19_s8 = sshll.u32 %s628_s0, 4  ;;  %s20_s8 = int_to_ptr.hbm [resolvable:$true] %s19_s8 }
   0x3   :  { %s34_s28 = sshll.u32 %s546_s27, 4  ;;  %s547_s9 = smov 64   ;;  %s35_s28 = int_to_ptr.vmem [resolvable:$true] %s34_s28 }
   0x4   :  { %s548_s10 = smov 4   ;;  %s549_s11 = smov [#allocation3]  }
   0x5   :  { %40 = dma.hbm_to_vmem [thread:$0]  %s33_s26, 1024, %s35_s28, [#allocation7], %s547_s9, %s547_s9, %s548_s10  }
   0x6   :  { %s21_s12 = sshll.u32 %s549_s11, 4  ;;  %s550_s13 = smov 128   ;;  %s22_s12 = int_to_ptr.vmem [resolvable:$true] %s21_s12 }
   0x7   :  { %s551_s14 = smov 8   ;;  %s47_s16 = sshll.u32 %s631_s3, 4  ;;  %s48_s16 = int_to_ptr.hbm [resolvable:$true] %s47_s16 }
   0x8   :  { %27 = dma.hbm_to_vmem [thread:$0]  %s20_s8, 256, %s22_s12, [#allocation4], %s550_s13, %s550_s13, %s551_s14  }
   0x9   :  { %s552_s17 = smov [#allocation8]  }
   0xa   :  { %s49_s0 = sshll.u32 %s552_s17, 4  ;;  %s50_s0 = int_to_ptr.vmem [resolvable:$true] %s49_s0 }
   0xb   :  { %55 = dma.hbm_to_vmem [thread:$0]  %s48_s16, 1024, %s50_s0, [#allocation7], %s547_s9, %s547_s9, %s548_s10  }
   0xc   :  { %540 = dma.done.wait [#allocation4], 256  }
   0xd   :  { %541 = vsyncadd [#allocation4], 4294967040 }
   0xe   :  { %542 = dma.done.wait [#allocation7], 2048  }
   0xf   :  { %543 = vsyncadd [#allocation7], 4294965248  ;;  %v419_v0 = vld [vmem:[#allocation6 + $0x38] sm:$0xff]  ;;  %v418_v1 = vld [vmem:[#allocation6 + $0x30] sm:$0xff]  ;;  %v265_v29 = vlaneseq  ;;  %s553_s23 = smov [#allocation9]   ;;  %s334_s26 = sshll.u32 %s635_s7, 4  ;;  %s335_s26 = int_to_ptr.hbm [resolvable:$true] %s334_s26 }
  0x10   :  { %157 = vmatpush.bf16.msra.mxu0 %v419_v0  ;;  %v427_v2 = vld [vmem:[#allocation8 + $0x38] sm:$0xff]  ;;  %v426_v3 = vld [vmem:[#allocation8 + $0x30] sm:$0xff]  ;;  %v417_v4 = vld [vmem:[#allocation6 + $0x28] sm:$0xff] }
  0x11   :  { %242 = vmatpush.bf16.msra.mxu1 %v427_v2  ;;  %v425_v5 = vld [vmem:[#allocation8 + $0x28] sm:$0xff]  ;;  %v416_v6 = vld [vmem:[#allocation6 + $0x20] sm:$0xff]  ;;  %v415_v8 = vld [vmem:[#allocation6 + $0x18] sm:$0xff]  ;;  %v266_v31 = vand.u32 127, %v265_v29 }
  0x12   :  { %v424_v7 = vld [vmem:[#allocation8 + $0x20] sm:$0xff]  ;;  %v414_v9 = vld [vmem:[#allocation6 + $0x10] sm:$0xff]  ;;  %v413_v10 = vld [vmem:[#allocation6 + $0x8] sm:$0xff] }
  0x13   :  { %v412_v11 = vld [vmem:[#allocation6] sm:$0xff]  ;;  %v74_v12 = vld [vmem:[#allocation3] sm:$0xff]  ;;  %v75_v13 = vld [vmem:[#allocation3 + $0x8] sm:$0xff]  ;;  %vm267_vm0 = vcmp.lt.s32.totalorder %v266_v31, 32 }
  0x14   :  { %158 = vmatpush.bf16.msra.mxu0 %v418_v1  ;;  %v88_v14 = vpack.c.bf16 %v75_v13, %v74_v12  ;;  %v423_v15 = vld [vmem:[#allocation8 + $0x18] sm:$0xff]  ;;  %v422_v16 = vld [vmem:[#allocation8 + $0x10] sm:$0xff]  ;;  %v421_v17 = vld [vmem:[#allocation8 + $0x8] sm:$0xff] }
  0x15   :  { %243 = vmatpush.bf16.msra.mxu1 %v426_v3  ;;  %v420_v18 = vld [vmem:[#allocation8] sm:$0xff]  ;;  %v436_v20 = vld [vmem:[%s630_s2] ss:$0 sm:$0xff] }
  0x16   :  { %v437_v30 = vld [vmem:[%s632_s4] ss:$0 sm:$0xff] }
  0x17   :  { %v84_v32 = vadd.f32 %v437_v30, %v74_v12  ;;  %v85_v36 = vadd.f32 %v437_v30, %v75_v13  ;;  %v438_v0 = vld [vmem:[%s633_s5] ss:$0 sm:$0xff]  ;;  %s332_s5 = sshll.u32 %s553_s23, 4  ;;  %s333_s5 = int_to_ptr.vmem [resolvable:$true] %s332_s5 }
  0x18   :  { %159 = vmatpush.bf16.msra.mxu0 %v417_v4  ;;  %v439_v4 = vld [vmem:[%s634_s6] ss:$0 sm:$0xff] }
  0x19   :  { %244 = vmatpush.bf16.msra.mxu1 %v425_v5 }
  0x1c   :  { %160 = vmatpush.bf16.msra.mxu0 %v416_v6 }
  0x1d   :  { %245 = vmatpush.bf16.msra.mxu1 %v424_v7 }
  0x20   :  { %161 = vmatpush.bf16.msra.mxu0 %v415_v8 }
  0x21   :  { %246 = vmatpush.bf16.msra.mxu1 %v423_v15 }
  0x24   :  { %162 = vmatpush.bf16.msra.mxu0 %v414_v9 }
  0x25   :  { %247 = vmatpush.bf16.msra.mxu1 %v422_v16 }
  0x28   :  { %163 = vmatpush.bf16.msra.mxu0 %v413_v10 }
  0x29   :  { %248 = vmatpush.bf16.msra.mxu1 %v421_v17 }
  0x2c   :  { %164 = vmatpush.bf16.msra.mxu0 %v412_v11 }
  0x2d   :  { %249 = vmatpush.bf16.msra.mxu1 %v420_v18 }
  0x2f   :  { %165 = vmatmul.bf16.vlgmr.msra.gmra.mxu0 %v88_v14 }
  0xac   :  { %v166_v19 = vpop.f32.mrf.mxu0 }
  0xad   :  { %v167_v21 = vadd.f32 %v436_v20, %v166_v19 }
  0xaf   :  { %v171_v23 = vmul.f32 0.01, %v167_v21 }
  0xb1   :  { %v173_v26 = vmax.f32 %v167_v21, %v171_v23 }
  0xb4   :  { %v168_v22 = vpop.f32.mrf.mxu0 }
  0xb5   :  { %v169_v24 = vadd.f32 %v436_v20, %v168_v22 }
  0xb7   :  { %v172_v25 = vmul.f32 0.01, %v169_v24 }
  0xb9   :  { %v174_v27 = vmax.f32 %v169_v24, %v172_v25 }
  0xbb   :  { %v177_v28 = vpack.c.bf16 %v174_v27, %v173_v26 }
  0xbd   :  { %250 = vmatmul.bf16.vlgmr.msra.gmra.mxu1 %v177_v28 }
 0x13a   :  { %v251_v33 = vpop.f32.mrf.mxu1 }
 0x13b   :  { %v256_v34 = vadd.f32 %v251_v33, %v84_v32 }
 0x13d   :  { %v270_v35 = vsel %vm267_vm0, %v256_v34, 0.0 }
 0x13e   :  { %272 = vadd.xlane.f32.xlu0 %v270_v35 }
 0x142   :  { %v253_v37 = vpop.f32.mrf.mxu1 }
 0x143   :  { %v257_v38 = vadd.f32 %v253_v37, %v85_v36 }
 0x145   :  { %v271_v39 = vsel %vm267_vm0, %v257_v38, 0.0 }
 0x146   :  { %274 = vadd.xlane.f32.xlu0 %v271_v39 }
 0x1b1   :  { %v273_v40 = vpop.xlane.xlu0 %272 }
 0x1b2   :  { %v276_v41 = vmul.f32 0.03125, %v273_v40 }
 0x1b4   :  { %v278_v42 = vsub.f32 %v270_v35, %v276_v41 }
 0x1b6   :  { %v280_v43 = vsel %vm267_vm0, %v278_v42, 0.0 }
 0x1b7   :  { %v282_v44 = vmul.f32 %v280_v43, %v280_v43 }
 0x1b9   :  { %284 = vadd.xlane.f32.xlu1 %v282_v44  ;;  %v275_v45 = vpop.xlane.xlu0 %274 }
 0x1ba   :  { %v277_v46 = vmul.f32 0.03125, %v275_v45 }
 0x1bc   :  { %v279_v47 = vsub.f32 %v271_v39, %v277_v46 }
 0x1be   :  { %v281_v48 = vsel %vm267_vm0, %v279_v47, 0.0 }
 0x1bf   :  { %v283_v49 = vmul.f32 %v281_v48, %v281_v48 }
 0x1c1   :  { %286 = vadd.xlane.f32.xlu1 %v283_v49 }
 0x22c   :  { %v285_v50 = vpop.xlane.xlu1 %284 }
 0x22d   :  { %v288_v51 = vmul.f32 0.03125, %v285_v50 }
 0x22f   :  { %v290_v52 = vadd.f32 1e-06, %v288_v51 }
 0x231   :  { %440 = vrsqrt.f32 %v290_v52  ;;  %vm298_vm2 = vweird.f32 %v290_v52 }
 0x234   :  { %v287_v53 = vpop.xlane.xlu1 %286 }
 0x235   :  { %v289_v54 = vmul.f32 0.03125, %v287_v53 }
 0x237   :  { %v441_v55 = vpop.eup %440  ;;  %v291_v56 = vadd.f32 1e-06, %v289_v54 }
 0x238   :  { %v293_v57 = vmul.f32 %v441_v55, %v290_v52  ;;  %vm299_vm1 = vweird.f32 %v441_v55 }
 0x239   :  { %442 = vrsqrt.f32 %v291_v56  ;;  %vm300_vm3 = vmor %vm298_vm2, %vm299_vm1  ;;  %vm308_vm5 = vweird.f32 %v291_v56 }
 0x23a   :  { %v294_v58 = vmul.f32 %v441_v55, %v293_v57 }
 0x23c   :  { %v295_v59 = vmul.f32 0.5, %v294_v58 }
 0x23e   :  { %v296_v60 = vsub.f32 1.5, %v295_v59 }
 0x23f   :  { %v443_v61 = vpop.eup %442 }
 0x240   :  { %v297_v62 = vmul.f32 %v441_v55, %v296_v60  ;;  %v303_v63 = vmul.f32 %v443_v61, %v291_v56  ;;  %vm309_vm4 = vweird.f32 %v443_v61 }
 0x241   :  { %vm310_vm6 = vmor %vm308_vm5, %vm309_vm4 }
 0x242   :  { %v301_v1 = vsel %vm300_vm3, %v441_v55, %v297_v62  ;;  %v304_v2 = vmul.f32 %v443_v61, %v303_v63 }
 0x243   :  { %v312_v3 = vmul.f32 %v301_v1, %v280_v43 }
 0x244   :  { %v305_v5 = vmul.f32 0.5, %v304_v2 }
 0x245   :  { %v318_v6 = vmul.f32 %v438_v0, %v312_v3 }
 0x246   :  { %v306_v7 = vsub.f32 1.5, %v305_v5 }
 0x247   :  { %v324_v8 = vadd.f32 %v439_v4, %v318_v6 }
 0x248   :  { %v307_v9 = vmul.f32 %v443_v61, %v306_v7 }
 0x249   :  { %326 = vst [vmem:[#allocation9] sm:$0xff] %v324_v8 }
 0x24a   :  { %v311_v10 = vsel %vm310_vm6, %v443_v61, %v307_v9 }
 0x24b   :  { %v313_v11 = vmul.f32 %v311_v10, %v281_v48 }
 0x24d   :  { %v319_v12 = vmul.f32 %v438_v0, %v313_v11 }
 0x24f   :  { %v325_v13 = vadd.f32 %v439_v4, %v319_v12 }
 0x251   :  { %327 = vst [vmem:[#allocation9 + $0x8] sm:$0xff] %v325_v13 }
 0x252   :  { %340 = dma.vmem_to_hbm [thread:$0]  %s333_s5, 256, %s335_s26, [#allocation5], %s550_s13, %s550_s13, %s551_s14  }
 0x253   :  { %544 = dma.done.wait [#allocation5], 256  }
 0x254   :  { %545 = vsyncadd [#allocation5], 4294967040 }
 0x255   :  { %345 = vsyncpa [#allocation4], 1 }
 0x256   :  { %346 = vsyncpa [#allocation7], 1 }
 0x257   :  { %347 = vsyncpa [#allocation5], 1 }

</bundles_post_ra>
